<compile_context>
chip_gen: v5e
topology: v5e:2x2
jax: 0.10.0
libtpu: 0.0.40
codegen_flags: <defaults>
</compile_context>

<pallas_src>
import functools

import jax
import jax.numpy as jnp
from jax.experimental import pallas as pl
from jax.experimental.pallas import tpu as pltpu

EPS = 1e-5  # nn.LayerNorm default


def _round_up(a, m):
    return ((a + m - 1) // m) * m


def _prenorm_fused_kernel(x_ref, w_ref, b_ref, o_ref, *, d_true):
    # x_ref: (tm, Dk)  row tile (Dk = D, or D padded to 128 lanes with zeros)
    # w_ref: (Dk, tn)  folded linear weight tile (gamma absorbed), matmul dtype
    # b_ref: (1,  tn)  folded bias tile (beta @ W + wb), f32
    # o_ref: (tm, tn)  output tile
    x = x_ref[...].astype(jnp.float32)

    # LayerNorm statistics in f32.  Any padded lanes are zero, so plain sums
    # over the lane extent are exact; divide by the TRUE feature dim.
    inv_d = 1.0 / d_true
    s = jnp.sum(x, axis=-1, keepdims=True)
    sq = jnp.sum(x * x, axis=-1, keepdims=True)
    mean = s * inv_d
    var = jnp.maximum(sq * inv_d - mean * mean, 0.0)
    xn = (x - mean) * jax.lax.rsqrt(var + EPS)

    # MXU matmul in the folded-weight dtype (bf16 x bf16 -> f32 accumulation).
    y = xn.astype(w_ref.dtype)
    out = jnp.dot(y, w_ref[...], preferred_element_type=jnp.float32)
    out = out + b_ref[...]
    o_ref[...] = out.astype(o_ref.dtype)


def _maybe_single_buffered(block_shape, index_map, single_buffer):
    """Grid-invariant operands don't need double-buffering (pure VMEM waste)."""
    if single_buffer:
        try:
            return pl.BlockSpec(block_shape, index_map,
                                pipeline_mode=pl.Buffered(1))
        except TypeError:  # older signature without pipeline_mode
            pass
    return pl.BlockSpec(block_shape, index_map)


def make_prenorm_linear(gamma, beta, w, wb, *, matmul_dtype=jnp.bfloat16):
    """Build PreNorm(fn=Linear(D, D)): returns apply(x) = Linear(LayerNorm(x)).

    Parameter folding / padding / casting happen ONCE here (hoisted out of the
    per-call path); the returned callable is jitted and closes over the folded
    constants.
    """
    D = int(gamma.shape[0])
    assert w.shape == (D, D) and wb.shape == (D,) and beta.shape == (D,)

    # ---- one-time parameter folding ----
    gf = gamma.astype(jnp.float32)
    bf = beta.astype(jnp.float32)
    wf = w.astype(jnp.float32)
    w_fold = gf[:, None] * wf                        # (D, D) : gamma absorbed
    b_fold = bf @ wf + wb.astype(jnp.float32)        # (D,)   : beta @ W + wb

    # Lane-dense padding ONLY when D is not a multiple of 128.
    Dp = _round_up(D, 128)
    lane_pad = Dp != D
    if lane_pad:
        w_fold = jnp.pad(w_fold, ((0, Dp - D), (0, Dp - D)))
        b_fold = jnp.pad(b_fold, (0, Dp - D))
    wp = w_fold.astype(matmul_dtype)                 # (Dp, Dp)
    bp = b_fold[None, :].astype(jnp.float32)         # (1, Dp)
    w_itemsize = jnp.dtype(matmul_dtype).itemsize

    # ---- VMEM budget: ~75% of per-core capacity (48 MiB v7x, 96 MiB v5e/v6e) ----
    try:
        info = pltpu.get_tpu_info()
        vmem_cap = int(getattr(info, "vmem_capacity_bytes", 64 * 2**20))
    except Exception:
        vmem_cap = 64 * 2**20
    vmem_budget = int(min(max(vmem_cap, 32 * 2**20), 128 * 2**20) * 0.75)

    kernel = functools.partial(_prenorm_fused_kernel, d_true=float(D))

    @jax.jit
    def apply(x):
        B, N, D_in = x.shape
        assert D_in == D, "feature dim mismatch with folded parameters"
        M = B * N
        x_dtype = x.dtype
        x_itemsize = jnp.dtype(x_dtype).itemsize

        x2 = x.reshape(M, D)
        if lane_pad:
            # One extra pass, only for D % 128 != 0 (keeps stores lane-dense).
            x2 = jnp.pad(x2, ((0, 0), (0, Dp - D)))

        # ---- row tile: ~2 MiB x tiles, dtype-aligned sublanes, >=2 steps ----
        sub = {1: 32, 2: 16}.get(x_itemsize, 8)
        tm = (2 * 2**20) // max(Dp * x_itemsize, 1)
        tm = int(min(1024, max(256, tm)))
        tm = min(_round_up(tm, sub), _round_up(M, sub))
        if M > sub and pl.cdiv(M, tm) < 2:
            # Guarantee >=2 row blocks so v7x's second TensorCore has work.
            tm = max(sub, _round_up(pl.cdiv(M, 2), sub))
        n_row = pl.cdiv(M, tm)

        # ---- column tiling of W only when it can't stay VMEM-resident ----
        w_bytes = Dp * Dp * w_itemsize
        w_resident_budget = min(32 * 2**20, vmem_budget // 3)
        if w_bytes <= w_resident_budget:
            tn = Dp
        else:
            tn = ((8 * 2**20) // (Dp * w_itemsize)) // 128 * 128
            tn = int(max(128, min(tn, Dp)))
        n_col = pl.cdiv(Dp, tn)
        single_w = n_col == 1  # grid-invariant W/bias -> single buffer

        # ---- VMEM limit from actual buffer counts + f32 temporaries ----
        est = (2 * tm * Dp * x_itemsize                    # x tiles (double-buffered)
               + 2 * tm * tn * x_itemsize                  # out tiles
               + (1 if single_w else 2) * Dp * tn * w_itemsize
               + 2 * tn * 4                                # bias
               + 3 * tm * max(Dp, tn) * 4)                 # in-kernel f32 temps
        vmem_limit = int(min(vmem_budget,
                             max(int(est * 1.2) + (2 << 20), 16 * 2**20)))

        out = pl.pallas_call(
            kernel,
            out_shape=jax.ShapeDtypeStruct((M, Dp), x_dtype),
            grid=(n_row, n_col),
            in_specs=[
                pl.BlockSpec((tm, Dp), lambda i, j: (i, 0)),   # x row tile
                _maybe_single_buffered((Dp, tn), lambda i, j: (0, j), single_w),
                _maybe_single_buffered((1, tn), lambda i, j: (0, j), single_w),
            ],
            out_specs=pl.BlockSpec((tm, tn), lambda i, j: (i, j)),
            compiler_params=pltpu.CompilerParams(
                dimension_semantics=("parallel", "arbitrary"),
                vmem_limit_bytes=vmem_limit),
        )(x2, wp, bp)

        if lane_pad:
            out = out[:, :D]
        return out.reshape(B, N, D)

    return apply


def _reference(x, gamma, beta, w, wb):
    xf = x.astype(jnp.float32)
    mean = jnp.mean(xf, axis=-1, keepdims=True)
    var = jnp.mean((xf - mean) ** 2, axis=-1, keepdims=True)
    xn = (xf - mean) / jnp.sqrt(var + EPS)
    y = xn * gamma.astype(jnp.float32) + beta.astype(jnp.float32)
    return y @ w.astype(jnp.float32) + wb.astype(jnp.float32)


def _run_case(key, B, N, D, *, x_dtype, matmul_dtype, atol, rtol):
    kx, kw, kb, kg, kbe = jax.random.split(key, 5)
    x = jax.random.normal(kx, (B, N, D), dtype=jnp.float32).astype(x_dtype)
    gamma = 1.0 + 0.1 * jax.random.normal(kg, (D,), dtype=jnp.float32)
    beta = 0.1 * jax.random.normal(kbe, (D,), dtype=jnp.float32)
    w = jax.random.normal(kw, (D, D), dtype=jnp.float32) * (1.0 / jnp.sqrt(D))
    wb = jax.random.normal(kb, (D,), dtype=jnp.float32) * 0.02

    fn = make_prenorm_linear(gamma, beta, w, wb, matmul_dtype=matmul_dtype)
    out = jax.block_until_ready(fn(x))
    assert out.shape == (B, N, D)
    assert out.dtype == x_dtype
    ref = _reference(x, gamma, beta, w, wb)
    ok = jnp.allclose(out.astype(jnp.float32), ref, atol=atol, rtol=rtol)
    assert bool(ok), (
        f"mismatch vs reference (B={B}, N={N}, D={D}, "
        f"x={x_dtype}, mxu={matmul_dtype})")


if __name__ == "__main__":
    key = jax.random.PRNGKey(0)
    k1, k2, k3, k4 = jax.random.split(key, 4)

    # Small shape consistent with the module (batch=2, seq=8, hidden=32),
    # strict f32 MXU path.
    _run_case(k1, B=2, N=8, D=32,
              x_dtype=jnp.float32, matmul_dtype=jnp.float32,
              atol=1e-4, rtol=1e-4)

    # Ragged row count + multi-row-block grid + lane padding (D=96 -> 128).
    _run_case(k2, B=2, N=150, D=96,
              x_dtype=jnp.float32, matmul_dtype=jnp.float32,
              atol=1e-4, rtol=1e-4)

    # Lane-aligned D: completely unpadded HBM in/out (no wrapper copies).
    _run_case(k3, B=2, N=64, D=128,
              x_dtype=jnp.float32, matmul_dtype=jnp.float32,
              atol=2e-4, rtol=2e-4)

    # bf16 MXU hot path (folded W cast to bf16 once) at bf16-level tolerance.
    _run_case(k4, B=2, N=64, D=128,
              x_dtype=jnp.bfloat16, matmul_dtype=jnp.bfloat16,
              atol=7.5e-2, rtol=5e-2)

    # TODO(synk): `fn` in PreNorm is an arbitrary module; it is synthesized here
    # as Linear(dim, dim) so the LayerNorm + fn fusion has a concrete hot path.

    print("KERNEL_OK")
</pallas_src>

<mosaic_0001>
module attributes {stable_mosaic.version = 11 : i64} {
  func.func @_prenorm_fused_kernel(%arg0: i32, %arg1: i32, %arg2: memref<8x128xf32, #tpu.memory_space<vmem>>, %arg3: memref<128x128xf32, #tpu.memory_space<vmem>>, %arg4: memref<1x128xf32, #tpu.memory_space<vmem>>, %arg5: memref<8x128xf32, #tpu.memory_space<vmem>>) attributes {dimension_semantics = [#tpu.dimension_semantics<parallel>, #tpu.dimension_semantics<arbitrary>], iteration_bounds = array<i64: 2, 1>, scalar_prefetch = 0 : i64, scratch_operands = 0 : i64, tpu.core_type = #tpu.core_type<tc>, window_params = [{transform_indices = @transform_0, window_bounds = array<i64: 8, 128>}, {pipeline_mode = #tpu.pipeline_mode<synchronous>, transform_indices = @transform_1, window_bounds = array<i64: 128, 128>}, {pipeline_mode = #tpu.pipeline_mode<synchronous>, transform_indices = @transform_2, window_bounds = array<i64: 1, 128>}, {transform_indices = @transform_3, window_bounds = array<i64: 8, 128>}]} {
    %c0 = arith.constant 0 : index
    %c0_0 = arith.constant 0 : index
    %0 = vector.load %arg2[%c0, %c0_0] : memref<8x128xf32, #tpu.memory_space<vmem>>, vector<8x128xf32>
    %cst = arith.constant dense<0.000000e+00> : vector<8xf32>
    %1 = vector.multi_reduction <add>, %0, %cst [1] : vector<8x128xf32> to vector<8xf32>
    %2 = vector.shape_cast %1 : vector<8xf32> to vector<8x1xf32>
    %3 = arith.mulf %0, %0 : vector<8x128xf32>
    %cst_1 = arith.constant dense<0.000000e+00> : vector<8xf32>
    %4 = vector.multi_reduction <add>, %3, %cst_1 [1] : vector<8x128xf32> to vector<8xf32>
    %5 = vector.shape_cast %4 : vector<8xf32> to vector<8x1xf32>
    %cst_2 = arith.constant 3.125000e-02 : f32
    %6 = vector.broadcast %cst_2 : f32 to vector<8x1xf32>
    %7 = arith.mulf %2, %6 : vector<8x1xf32>
    %cst_3 = arith.constant 3.125000e-02 : f32
    %8 = vector.broadcast %cst_3 : f32 to vector<8x1xf32>
    %9 = arith.mulf %5, %8 : vector<8x1xf32>
    %10 = arith.mulf %7, %7 : vector<8x1xf32>
    %11 = arith.subf %9, %10 : vector<8x1xf32>
    %cst_4 = arith.constant 0.000000e+00 : f32
    %12 = vector.broadcast %cst_4 : f32 to vector<8x1xf32>
    %13 = arith.maximumf %11, %12 : vector<8x1xf32>
    %14 = vector.broadcast %7 : vector<8x1xf32> to vector<8x128xf32>
    %15 = arith.subf %0, %14 : vector<8x128xf32>
    %cst_5 = arith.constant 9.99999974E-6 : f32
    %16 = vector.broadcast %cst_5 : f32 to vector<8x1xf32>
    %17 = arith.addf %13, %16 : vector<8x1xf32>
    %18 = math.rsqrt %17 : vector<8x1xf32>
    %19 = vector.broadcast %18 : vector<8x1xf32> to vector<8x128xf32>
    %20 = arith.mulf %15, %19 : vector<8x128xf32>
    %c0_6 = arith.constant 0 : index
    %c0_7 = arith.constant 0 : index
    %21 = vector.load %arg3[%c0_6, %c0_7] : memref<128x128xf32, #tpu.memory_space<vmem>>, vector<128x128xf32>
    %cst_8 = arith.constant dense<0.000000e+00> : vector<8x128xf32>
    %22 = tpu.matmul %20, %21, %cst_8 {dimension_numbers = #tpu.dot_dimension_numbers<[1], [0], [0], [1], [0, 0, 1, 1], [], []>} : vector<8x128xf32>, vector<128x128xf32>, vector<8x128xf32> -> vector<8x128xf32>
    %c0_9 = arith.constant 0 : index
    %c0_10 = arith.constant 0 : index
    %23 = vector.load %arg4[%c0_9, %c0_10] : memref<1x128xf32, #tpu.memory_space<vmem>>, vector<1x128xf32>
    %24 = vector.broadcast %23 : vector<1x128xf32> to vector<8x128xf32>
    %25 = arith.addf %22, %24 : vector<8x128xf32>
    %c0_11 = arith.constant 0 : index
    %c0_12 = arith.constant 0 : index
    %26 = vector.load %arg5[%c0_11, %c0_12] : memref<8x128xf32, #tpu.memory_space<vmem>>, vector<8x128xf32>
    tpu.vector_store %arg5[%c0_11, %c0_12], %25 {strides = array<i32>} : memref<8x128xf32, #tpu.memory_space<vmem>>, vector<8x128xf32>,
    return
  }
  func.func @transform_0(%arg0: i32, %arg1: i32) -> (i32, i32) {
    %c0_i32 = arith.constant 0 : i32
    %c0_i32_0 = arith.constant 0 : i32
    return %arg0, %c0_i32 : i32, i32
  }
  func.func @transform_1(%arg0: i32, %arg1: i32) -> (i32, i32) {
    %c0_i32 = arith.constant 0 : i32
    %c0_i32_0 = arith.constant 0 : i32
    return %c0_i32, %arg1 : i32, i32
  }
  func.func @transform_2(%arg0: i32, %arg1: i32) -> (i32, i32) {
    %c0_i32 = arith.constant 0 : i32
    %c0_i32_0 = arith.constant 0 : i32
    return %c0_i32, %arg1 : i32, i32
  }
  func.func @transform_3(%arg0: i32, %arg1: i32) -> (i32, i32) {
    %c0_i32 = arith.constant 0 : i32
    return %arg0, %arg1 : i32, i32
  }
}

</mosaic_0001>

<bundles_post_ra>
// kernel: apply.1
= control target key start
LH: loop header
LB: loop body
LE: loop exit
PB: predicated region body
PF: predicated region fallthrough
CT: control target
= control target key end

     0   :  { %8 = vsyncpa [#allocation3], 0  ;;  %s520_s12 = smov 0   ;;  %s522_s13 = smov 0   ;;  %s567_s0 = inlined_call_operand.vmem [shape: f32[16,128], index: 0, kind: input, shape index: {}]   ;;  %s568_s1 = inlined_call_operand.hbm [shape: f32[128,128], index: 1, kind: input, shape index: {}]   ;;  %s569_s2 = inlined_call_operand.vmem [shape: f32[1,128], index: 2, kind: input, shape index: {}]   ;;  %s570_s3 = inlined_call_operand.vmem [shape: f32[16,128], index: 3, kind: output, shape index: {}]  }
   0x1   :  { %s524_s14 = smov 0  }
   0x2 LB: > { %s387_s15 = sadd.s32 4294967295, %s495_s14   ;;  %s26_s16 = sadd.s32 1, %s491_s13  ;;  %s495_s14 = sphi %s524_s14, %s14_s14   ;;  %s491_s13 = sphi %s522_s13, %s572_s13   ;;  %s487_s12 = sphi %s520_s12, %s571_s12  }
   0x3   : > { %p28_p0 = scmp.ge.s32.totalorder %s26_s16, 2  ;;  %p389_p1 = scmp.ge.s32.totalorder %s495_s14, 1 }
   0x4   : > { %p137_p2 = scmp.lt.s32.totalorder %s495_s14, 3  ;;  %p407_p4 = scmp.eq.s32.totalorder %s387_s15, 0 }
   0x5   : > { %s574_s16 = smov (%p28_p0, %s26_s16), 0  ;;  %s150_s19 = sshll.u32 %s568_s1, 4  ;;  %s151_s19 = int_to_ptr.hbm [resolvable:$true] %s150_s19 }
   0x6   : > { %p138_p3 = pnand %p389_p1, %p137_p2  ;;  %s497_s20 = smov [#allocation2]  }
   0x7   : > { %s152_s21 = sshll.u32 %s497_s20, 4  ;;  %s498_s22 = smov 128   ;;  %s153_s21 = int_to_ptr.vmem [resolvable:$true] %s152_s21 }
   0x8   : > { %p403_p5 = pneg %p138_p3  ;;  %s499_s23 = smov 8  }
   0x9   : > { %181 = sbr.rel (%p138_p3) target bundleno = 302 (0x12e), region = 32 }
   0xa   : > { %p404_p6 = pnand %p407_p4, %p403_p5 }
   0xc   : > { %406 = dma.hbm_to_vmem [thread:$0]  (!%p404_p6), %s151_s19, 2048, %s153_s21, [#allocation3], %s498_s22, %s498_s22, %s499_s23  }
   0xe   : > { %482 = dma.done.wait (%p407_p4), [#allocation3], 2048  }
   0xf   : > { %484 = vsyncadd (%p407_p4), [#allocation3], 4294965248  ;;  %p210_p7 = scmp.lt.s32.totalorder %s487_s12, 1  ;;  %v263_v2 = vld [vmem:[#allocation2 + $0x78] sm:$0xff]  ;;  %v262_v3 = vld [vmem:[#allocation2 + $0x70] sm:$0xff] }
  0x10   : > { %268 = vmatpush.msra.mxu0 %v263_v2  ;;  %v261_v4 = vld [vmem:[#allocation2 + $0x68] sm:$0xff]  ;;  %v260_v5 = vld [vmem:[#allocation2 + $0x60] sm:$0xff]  ;;  %v259_v6 = vld [vmem:[#allocation2 + $0x58] sm:$0xff] }
  0x11   : > { %s576_s12 = smov (!%p210_p7, %s487_s12), 1  ;;  %v258_v7 = vld [vmem:[#allocation2 + $0x50] sm:$0xff]  ;;  %v257_v8 = vld [vmem:[#allocation2 + $0x48] sm:$0xff]  ;;  %v256_v9 = vld [vmem:[#allocation2 + $0x40] sm:$0xff] }
  0x12   : > { %s395_s24 = sshll.u32 %s576_s12, 3  ;;  %269 = vmatpush.msra.mxu0 %v262_v3  ;;  %v255_v10 = vld [vmem:[#allocation2 + $0x38] sm:$0xff]  ;;  %v254_v11 = vld [vmem:[#allocation2 + $0x30] sm:$0xff]  ;;  %v253_v12 = vld [vmem:[#allocation2 + $0x28] sm:$0xff] }
  0x13   : > { %s213_s27 = scalar_lea.vmem %s567_s0, %s395_s24  ;;  %v252_v13 = vld [vmem:[#allocation2 + $0x20] sm:$0xff]  ;;  %v251_v14 = vld [vmem:[#allocation2 + $0x18] sm:$0xff]  ;;  %v250_v15 = vld [vmem:[#allocation2 + $0x10] sm:$0xff]  ;;  %s223_s5 = scalar_lea.vmem %s570_s3, %s395_s24 }
  0x14   : > { %v224_v0 = vld [vmem:[%s213_s27] sm:$0xff]  ;;  %270 = vmatpush.msra.mxu0 %v261_v4  ;;  %v249_v16 = vld [vmem:[#allocation2 + $0x8] sm:$0xff] }
  0x15   : > { %225 = vadd.xlane.f32.xlu0 %v224_v0  ;;  %v227_v1 = vmul.f32 %v224_v0, %v224_v0  ;;  %v248_v18 = vld [vmem:[#allocation2] sm:$0xff] }
  0x16   : > { %271 = vmatpush.msra.mxu0 %v260_v5  ;;  %v436_v35 = vld [vmem:[%s569_s2] ss:$0 sm:$0xff] }
  0x18   : > { %272 = vmatpush.msra.mxu0 %v259_v6 }
  0x1a   : > { %273 = vmatpush.msra.mxu0 %v258_v7 }
  0x1c   : > { %274 = vmatpush.msra.mxu0 %v257_v8 }
  0x1d   : > { %228 = vadd.xlane.f32.xlu0 %v227_v1 }
  0x1e   : > { %275 = vmatpush.msra.mxu0 %v256_v9 }
  0x20   : > { %276 = vmatpush.msra.mxu0 %v255_v10 }
  0x22   : > { %277 = vmatpush.msra.mxu0 %v254_v11 }
  0x24   : > { %278 = vmatpush.msra.mxu0 %v253_v12 }
  0x26   : > { %279 = vmatpush.msra.mxu0 %v252_v13 }
  0x28   : > { %280 = vmatpush.msra.mxu0 %v251_v14 }
  0x2a   : > { %281 = vmatpush.msra.mxu0 %v250_v15 }
  0x2c   : > { %282 = vmatpush.msra.mxu0 %v249_v16 }
  0x2e   : > { %283 = vmatpush.msra.mxu0 %v248_v18 }
  0x88   : > { %v226_v17 = vpop.xlane.xlu0 %225 }
  0x89   : > { %v230_v19 = vmul.f32 0.03125, %v226_v17 }
  0x8b   : > { %v232_v21 = vmul.f32 %v230_v19, %v230_v19  ;;  %v235_v32 = vsub.f32 %v224_v0, %v230_v19 }
  0x90   : > { %v229_v20 = vpop.xlane.xlu0 %228 }
  0x91   : > { %v231_v22 = vmul.f32 0.03125, %v229_v20 }
  0x93   : > { %v233_v23 = vsub.f32 %v231_v22, %v232_v21 }
  0x95   : > { %v234_v24 = vmax.f32 %v233_v23, 0.0 }
  0x97   : > { %v236_v25 = vadd.f32 1e-05, %v234_v24 }
  0x99   : > { %437 = vrsqrt.f32 %v236_v25  ;;  %vm243_vm1 = vweird.f32 %v236_v25 }
  0x9f   : > { %v438_v26 = vpop.eup %437 }
  0xa0   : > { %v238_v27 = vmul.f32 %v438_v26, %v236_v25  ;;  %vm244_vm0 = vweird.f32 %v438_v26 }
  0xa1   : > { %vm245_vm2 = vmor %vm243_vm1, %vm244_vm0 }
  0xa2   : > { %v239_v28 = vmul.f32 %v438_v26, %v238_v27 }
  0xa4   : > { %v240_v29 = vmul.f32 0.5, %v239_v28 }
  0xa6   : > { %v241_v30 = vsub.f32 1.5, %v240_v29 }
  0xa8   : > { %v242_v31 = vmul.f32 %v438_v26, %v241_v30 }
  0xaa   : > { %v246_v33 = vsel %vm245_vm2, %v438_v26, %v242_v31 }
  0xab   : > { %v247_v34 = vmul.f32 %v246_v33, %v235_v32 }
  0xad   : > { %284 = vmatmul.f32.vlgmr.msra.gmra.mxu0 %v247_v34 }
 0x12a   : > { %v285_v36 = vpop.f32.mrf.mxu0 }
 0x12b   : > { %v286_v37 = vadd.f32 %v436_v35, %v285_v36 }
 0x12d   : > { %288 = vst [vmem:[%s223_s5] sm:$0xff] %v286_v37 }
 0x12e PF: > { %s14_s14 = sadd.s32 1, %s495_s14   ;;  %s571_s12 = smov %s491_s13 }
 0x12f   : > { %p11_p8 = scmp.ge.s32.totalorder %s14_s14, 4   ;;  %s572_s13 = smov %s574_s16 }
 0x131   :  { %13 = sbr.rel (!%p11_p8) target bundleno = 2 (0x2), region = 71 }
 0x136   :  { %314 = vsyncpa [#allocation3], 1 }
 0x137   :  { %316 = vsyncpa [#allocation3 + $0x1], 1 }

</bundles_post_ra>
